<compile_context>
chip_gen: v5e
topology: v5e:2x2
jax: 0.10.0
libtpu: 0.0.40
codegen_flags: <defaults>
</compile_context>

<pallas_src>
import jax
import jax.numpy as jnp
from jax.experimental import pallas as pl
from jax.experimental.pallas import tpu as pltpu

IN_FEATURES = 28 * 28        # 784 (nn.Flatten of [B, 1, 28, 28])
NUM_CLASSES = 10
N_PAD = 128                  # lane-dense class axis for the matmul / softmax
TB_MAX = 2048                # per-tile batch rows (v6e/v7x sweet spot; fine on v5e)
NEG_INF = jnp.float32(-1e30)


def _classifier_kernel(x_ref, w_ref, b_ref, o_ref):
    # x_ref: [tb, 784] f32, w_ref: [784, 128] bf16, b_ref: [1, 128] f32,
    # o_ref: [tb, 10] f32.
    # bf16 matmul (single MXU pass), f32 accumulation; the bias carries the -1e30
    # mask for the 118 padded class columns, so exp() underflows them to zero.
    logits = jnp.dot(x_ref[...].astype(jnp.bfloat16), w_ref[...],
                     preferred_element_type=jnp.float32) + b_ref[...]

    # Numerically-stable log-softmax over the (masked) class axis.
    m = jnp.max(logits, axis=-1, keepdims=True)
    shifted = logits - m
    lse = jnp.log(jnp.sum(jnp.exp(shifted), axis=-1, keepdims=True))
    log_probs = shifted - lse
    o_ref[...] = log_probs[:, :NUM_CLASSES].astype(o_ref.dtype)


def _round_up(x, m):
    return (x + m - 1) // m * m


def _choose_tiling(B):
    """Fewest near-equal batch tiles; avoids any batch padding whenever possible."""
    if B <= TB_MAX:
        # Prefer two equal tiles when free (uses both TensorCores on v7x).
        if B >= 16 and B % 16 == 0:
            return B // 2, 2, B
        return B, 1, B                         # single tile: block dim == full dim
    num_tiles = pl.cdiv(B, TB_MAX)
    tb = _round_up(pl.cdiv(B, num_tiles), 8)
    num_tiles = pl.cdiv(B, tb)
    return tb, num_tiles, num_tiles * tb


def dummy_classifier_forward(x_nchw, w, b):
    """x_nchw: [B, 1, 28, 28] f32; w: [784, 10] f32; b: [10] f32 -> [B, 10] log-probs."""
    B = x_nchw.shape[0]
    x_flat = x_nchw.reshape(B, IN_FEATURES)                  # nn.Flatten()

    tb, num_tiles, b_pad = _choose_tiling(B)
    if b_pad != B:
        # Only fires for ragged B > TB_MAX (never for B <= 2048).
        # TODO(synk): mask the ragged tail in-kernel instead of padding x.
        x_flat = jnp.pad(x_flat, ((0, b_pad - B), (0, 0)))

    # Lane-dense class axis: W zero-padded to 128 columns and shipped in bf16
    # (single-pass MXU); the padded-column mask is folded into the bias.
    w_p = jnp.pad(w, ((0, 0), (0, N_PAD - NUM_CLASSES))).astype(jnp.bfloat16)
    b_p = jnp.concatenate(
        [b.reshape(1, NUM_CLASSES).astype(jnp.float32),
         jnp.full((1, N_PAD - NUM_CLASSES), NEG_INF, jnp.float32)], axis=1)

    cost = pl.CostEstimate(
        flops=2 * b_pad * IN_FEATURES * N_PAD,
        bytes_accessed=(b_pad * IN_FEATURES * 4              # x (f32, streamed)
                        + IN_FEATURES * N_PAD * 2            # W (bf16, resident)
                        + N_PAD * 4                          # bias (resident)
                        + b_pad * NUM_CLASSES * 4),          # narrow output
        transcendentals=b_pad * (N_PAD + 1),                 # exp + per-row log
    )

    out = pl.pallas_call(
        _classifier_kernel,
        out_shape=jax.ShapeDtypeStruct((b_pad, NUM_CLASSES), jnp.float32),
        grid=(num_tiles,),
        in_specs=[
            pl.BlockSpec((tb, IN_FEATURES), lambda i: (i, 0)),      # x: streamed per tile
            pl.BlockSpec((IN_FEATURES, N_PAD), lambda i: (0, 0)),   # W: resident in VMEM
            pl.BlockSpec((1, N_PAD), lambda i: (0, 0)),             # bias: resident
        ],
        out_specs=pl.BlockSpec((tb, NUM_CLASSES), lambda i: (i, 0)),
        compiler_params=pltpu.CompilerParams(
            dimension_semantics=("parallel",),      # shards batch tiles across TCs on v7x
            vmem_limit_bytes=40 * 1024 * 1024,
        ),
        cost_estimate=cost,
    )(x_flat, w_p, b_p)

    return out if b_pad == B else out[:B]


def _reference(x_nchw, w, b):
    x_flat = x_nchw.reshape(x_nchw.shape[0], -1)
    logits = x_flat @ w + b
    return jax.nn.log_softmax(logits, axis=-1)


if __name__ == "__main__":
    key = jax.random.PRNGKey(0)
    k_x, k_w, k_b = jax.random.split(key, 3)

    B = 2
    # MNIST-like NCHW input, consistent with the 28*28 Linear layer.
    x = jax.random.normal(k_x, (B, 1, 28, 28), dtype=jnp.float32)

    # Deterministic init mimicking nn.Linear's uniform(-1/sqrt(in), 1/sqrt(in)).
    fan_in = IN_FEATURES
    bound = 1.0 / (fan_in ** 0.5)
    w = jax.random.uniform(k_w, (fan_in, NUM_CLASSES), jnp.float32, -bound, bound)
    b = jax.random.uniform(k_b, (NUM_CLASSES,), jnp.float32, -bound, bound)

    out = dummy_classifier_forward(x, w, b)
    out = jax.block_until_ready(out)

    ref = _reference(x, w, b)
    assert out.shape == (B, NUM_CLASSES)
    # Matmul inputs are bf16 (f32 accumulation), so tolerance is loosened vs. f32 ref.
    assert jnp.allclose(out, ref, atol=2e-2, rtol=2e-2), "mismatch vs reference"
    assert bool(jnp.all(jnp.isfinite(out))), "non-finite output"

    print("KERNEL_OK")
</pallas_src>

<mosaic_0001>
module attributes {stable_mosaic.version = 11 : i64} {
  func.func @_classifier_kernel(%arg0: i32, %arg1: memref<2x784xf32, #tpu.memory_space<vmem>>, %arg2: memref<784x128xbf16, #tpu.memory_space<vmem>>, %arg3: memref<1x128xf32, #tpu.memory_space<vmem>>, %arg4: memref<2x10xf32, #tpu.memory_space<vmem>>) attributes {dimension_semantics = [#tpu.dimension_semantics<parallel>], iteration_bounds = array<i64: 1>, scalar_prefetch = 0 : i64, scratch_operands = 0 : i64, tpu.core_type = #tpu.core_type<tc>, window_params = [{transform_indices = @transform_0, window_bounds = array<i64: 2, 784>}, {pipeline_mode = #tpu.pipeline_mode<synchronous>, transform_indices = @transform_1, window_bounds = array<i64: 784, 128>}, {pipeline_mode = #tpu.pipeline_mode<synchronous>, transform_indices = @transform_2, window_bounds = array<i64: 1, 128>}, {transform_indices = @transform_3, window_bounds = array<i64: 2, 10>}]} {
    %c0 = arith.constant 0 : index
    %c0_0 = arith.constant 0 : index
    %0 = vector.load %arg1[%c0, %c0_0] : memref<2x784xf32, #tpu.memory_space<vmem>>, vector<2x784xf32>
    %1 = arith.truncf %0 : vector<2x784xf32> to vector<2x784xbf16>
    %c0_1 = arith.constant 0 : index
    %c0_2 = arith.constant 0 : index
    %2 = vector.load %arg2[%c0_1, %c0_2] : memref<784x128xbf16, #tpu.memory_space<vmem>>, vector<784x128xbf16>
    %cst = arith.constant dense<0.000000e+00> : vector<2x128xf32>
    %3 = tpu.matmul %1, %2, %cst {dimension_numbers = #tpu.dot_dimension_numbers<[1], [0], [0], [1], [0, 0, 1, 1], [], []>} : vector<2x784xbf16>, vector<784x128xbf16>, vector<2x128xf32> -> vector<2x128xf32>
    %c0_3 = arith.constant 0 : index
    %c0_4 = arith.constant 0 : index
    %4 = vector.load %arg3[%c0_3, %c0_4] : memref<1x128xf32, #tpu.memory_space<vmem>>, vector<1x128xf32>
    %5 = vector.broadcast %4 : vector<1x128xf32> to vector<2x128xf32>
    %6 = arith.addf %3, %5 : vector<2x128xf32>
    %cst_5 = arith.constant dense<0xFF800000> : vector<2xf32>
    %7 = vector.multi_reduction <maximumf>, %6, %cst_5 [1] : vector<2x128xf32> to vector<2xf32>
    %8 = vector.shape_cast %7 : vector<2xf32> to vector<2x1xf32>
    %9 = vector.broadcast %8 : vector<2x1xf32> to vector<2x128xf32>
    %10 = arith.subf %6, %9 : vector<2x128xf32>
    %11 = math.exp %10 : vector<2x128xf32>
    %cst_6 = arith.constant dense<0.000000e+00> : vector<2xf32>
    %12 = vector.multi_reduction <add>, %11, %cst_6 [1] : vector<2x128xf32> to vector<2xf32>
    %13 = vector.shape_cast %12 : vector<2xf32> to vector<2x1xf32>
    %14 = math.log %13 : vector<2x1xf32>
    %15 = vector.broadcast %14 : vector<2x1xf32> to vector<2x128xf32>
    %16 = arith.subf %10, %15 : vector<2x128xf32>
    %17 = vector.extract_strided_slice %16 {offsets = [0, 0], sizes = [2, 10], strides = [1, 1]} : vector<2x128xf32> to vector<2x10xf32>
    %c0_7 = arith.constant 0 : index
    %c0_8 = arith.constant 0 : index
    %18 = vector.load %arg4[%c0_7, %c0_8] : memref<2x10xf32, #tpu.memory_space<vmem>>, vector<2x10xf32>
    tpu.vector_store %arg4[%c0_7, %c0_8], %17 {strides = array<i32>} : memref<2x10xf32, #tpu.memory_space<vmem>>, vector<2x10xf32>,
    return
  }
  func.func @transform_0(%arg0: i32) -> (i32, i32) {
    %c0_i32 = arith.constant 0 : i32
    %c0_i32_0 = arith.constant 0 : i32
    return %arg0, %c0_i32 : i32, i32
  }
  func.func @transform_1(%arg0: i32) -> (i32, i32) {
    %c0_i32 = arith.constant 0 : i32
    %c0_i32_0 = arith.constant 0 : i32
    %c0_i32_1 = arith.constant 0 : i32
    return %c0_i32, %c0_i32_0 : i32, i32
  }
  func.func @transform_2(%arg0: i32) -> (i32, i32) {
    %c0_i32 = arith.constant 0 : i32
    %c0_i32_0 = arith.constant 0 : i32
    %c0_i32_1 = arith.constant 0 : i32
    return %c0_i32, %c0_i32_0 : i32, i32
  }
  func.func @transform_3(%arg0: i32) -> (i32, i32) {
    %c0_i32 = arith.constant 0 : i32
    %c0_i32_0 = arith.constant 0 : i32
    return %arg0, %c0_i32 : i32, i32
  }
}

</mosaic_0001>

<bundles_post_ra>
// kernel: tpu_custom_call.1
= control target key start
LH: loop header
LB: loop body
LE: loop exit
PB: predicated region body
PF: predicated region fallthrough
CT: control target
= control target key end

     0   :  { %8 = vsyncpa [#allocation3], 0  ;;  %s969_s0 = inlined_call_operand.hbm [shape: f32[2,784], index: 0, kind: input, shape index: {}]   ;;  %s970_s1 = inlined_call_operand.hbm [shape: bf16[784,128], index: 1, kind: input, shape index: {}]   ;;  %s971_s2 = inlined_call_operand.vmem [shape: f32[1,128], index: 2, kind: input, shape index: {}]   ;;  %s972_s3 = inlined_call_operand.hbm [shape: f32[2,10], index: 3, kind: output, shape index: {}]  }
   0x1   :  { %9 = vsyncpa [#allocation6], 0 }
   0x2   :  { %10 = vsyncpa [#allocation4], 0  ;;  %s16_s14 = sshll.u32 %s969_s0, 4  ;;  %s932_s15 = smov [#allocation2]   ;;  %s17_s14 = int_to_ptr.hbm [resolvable:$true] %s16_s14 }
   0x3   :  { %s18_s16 = sshll.u32 %s932_s15, 4  ;;  %s26_s19 = sshll.u32 %s970_s1, 4  ;;  %s19_s16 = int_to_ptr.vmem [resolvable:$true] %s18_s16  ;;  %s27_s19 = int_to_ptr.hbm [resolvable:$true] %s26_s19 }
   0x4   :  { %21 = dma.hbm_to_vmem [thread:$0]  %s17_s14, 224, %s19_s16, [#allocation3]  }
   0x5   :  { %s933_s20 = smov [#allocation5]   ;;  %s934_s22 = smov 64  }
   0x6   :  { %s28_s21 = sshll.u32 %s933_s20, 4  ;;  %s935_s23 = smov 4   ;;  %s29_s21 = int_to_ptr.vmem [resolvable:$true] %s28_s21 }
   0x7   :  { %34 = dma.hbm_to_vmem [thread:$0]  %s27_s19, 6272, %s29_s21, [#allocation6], %s934_s22, %s934_s22, %s935_s23  }
   0x8   :  { %926 = dma.done.wait [#allocation3], 224  }
   0x9   :  { %927 = vsyncadd [#allocation3], 4294967072 }
   0xa   :  { %928 = dma.done.wait [#allocation6], 6272  }
   0xb   :  { %929 = vsyncadd [#allocation6], 4294961024  ;;  %v802_v0 = vld [vmem:[#allocation5 + $0x38] sm:$0xff]  ;;  %v801_v3 = vld [vmem:[#allocation5 + $0x30] sm:$0xff]  ;;  %vm470_vm0 = vcmask 130048   ;;  %vm565_vm1 = vcmask 1041408  }
   0xc   :  { %v810_v1 = vld [vmem:[#allocation5 + $0x78] sm:$0xff]  ;;  %474 = vmatpush.bf16.msra.mxu0 %v802_v0  ;;  %v809_v4 = vld [vmem:[#allocation5 + $0x70] sm:$0xff]  ;;  %v800_v8 = vld [vmem:[#allocation5 + $0x28] sm:$0xff]  ;;  %s587_s27 = sshll.u32 %s972_s3, 4  ;;  %vm578_vm2 = vcmask 74752   ;;  %s588_s27 = int_to_ptr.hbm [resolvable:$true] %s587_s27 }
   0xd   :  { %v818_v2 = vld [vmem:[#allocation5 + $0xb8] sm:$0xff]  ;;  %487 = vmatpush.bf16.msra.mxu1 %v810_v1  ;;  %v817_v5 = vld [vmem:[#allocation5 + $0xb0] sm:$0xff]  ;;  %v808_v9 = vld [vmem:[#allocation5 + $0x68] sm:$0xff] }
   0xe   :  { %500 = vmatpush.bf16.msra.mxu2 %v818_v2  ;;  %v826_v6 = vld [vmem:[#allocation5 + $0xf8] sm:$0xff]  ;;  %v825_v7 = vld [vmem:[#allocation5 + $0xf0] sm:$0xff]  ;;  %v816_v10 = vld [vmem:[#allocation5 + $0xa8] sm:$0xff] }
   0xf   :  { %513 = vmatpush.bf16.msra.mxu3 %v826_v6  ;;  %v824_v11 = vld [vmem:[#allocation5 + $0xe8] sm:$0xff]  ;;  %v799_v12 = vld [vmem:[#allocation5 + $0x20] sm:$0xff]  ;;  %v46_v15 = vld [vmem:[#allocation2] sm:$0xff] }
  0x10   :  { %475 = vmatpush.bf16.msra.mxu0 %v801_v3  ;;  %v807_v13 = vld [vmem:[#allocation5 + $0x60] sm:$0xff]  ;;  %50 = vst [vmem:[#allocation1] ss:$4 sm:$0xff] %v46_v15  ;;  %v798_v17 = vld [vmem:[#allocation5 + $0x18] sm:$0xff]  ;;  %v797_v22 = vld [vmem:[#allocation5 + $0x10] sm:$0xff] }
  0x11   :  { %488 = vmatpush.bf16.msra.mxu1 %v809_v4  ;;  %v815_v14 = vld [vmem:[#allocation5 + $0xa0] sm:$0xff]  ;;  %v806_v18 = vld [vmem:[#allocation5 + $0x58] sm:$0xff]  ;;  %v805_v23 = vld [vmem:[#allocation5 + $0x50] sm:$0xff] }
  0x12   :  { %501 = vmatpush.bf16.msra.mxu2 %v817_v5  ;;  %v823_v16 = vld [vmem:[#allocation5 + $0xe0] sm:$0xff]  ;;  %v47_v19 = vld [vmem:[#allocation2 + $0x8] sm:$0x3f]  ;;  %v813_v24 = vld [vmem:[#allocation5 + $0x90] sm:$0xff] }
  0x13   :  { %514 = vmatpush.bf16.msra.mxu3 %v825_v7  ;;  %v814_v20 = vld [vmem:[#allocation5 + $0x98] sm:$0xff]  ;;  %52 = vst [vmem:[#allocation1 + $0x20] ss:$4 sm:$0xff] %v47_v19  ;;  %v821_v25 = vld [vmem:[#allocation5 + $0xd0] sm:$0xff]  ;;  %v796_v26 = vld [vmem:[#allocation5 + $0x8] sm:$0xff] }
  0x14   :  { %476 = vmatpush.bf16.msra.mxu0 %v800_v8  ;;  %v822_v21 = vld [vmem:[#allocation5 + $0xd8] sm:$0xff]  ;;  %v804_v27 = vld [vmem:[#allocation5 + $0x48] sm:$0xff]  ;;  %v795_v29 = vld [vmem:[#allocation5] sm:$0xff] }
  0x15   :  { %489 = vmatpush.bf16.msra.mxu1 %v808_v9  ;;  %v812_v28 = vld [vmem:[#allocation5 + $0x88] sm:$0xff]  ;;  %v803_v30 = vld [vmem:[#allocation5 + $0x40] sm:$0xff]  ;;  %v834_v34 = vld [vmem:[#allocation5 + $0x138] sm:$0xff] }
  0x16   :  { %502 = vmatpush.bf16.msra.mxu2 %v816_v10  ;;  %v820_v31 = vld [vmem:[#allocation5 + $0xc8] sm:$0xff]  ;;  %v842_v35 = vld [vmem:[#allocation5 + $0x178] sm:$0xff]  ;;  %v811_v36 = vld [vmem:[#allocation5 + $0x80] sm:$0xff] }
  0x17   :  { %515 = vmatpush.bf16.msra.mxu3 %v824_v11  ;;  %v53_v32 = vld.sshfl [vmem:[#allocation1] sm:$0xff pattern:$0x73625140]  ;;  %v54_v33 = vld.sshfl [vmem:[#allocation1 + $0x8] sm:$0xff pattern:$0x73625140] }
  0x18   :  { %477 = vmatpush.bf16.msra.mxu0 %v799_v12  ;;  %v55_v37 = vld.sshfl [vmem:[#allocation1 + $0x10] sm:$0xff pattern:$0x73625140]  ;;  %v67_v38 = vpack.c.bf16 %v53_v32, %v53_v32  ;;  %v68_v39 = vpack.c.bf16 %v54_v33, %v54_v33  ;;  %v56_v42 = vld.sshfl [vmem:[#allocation1 + $0x18] sm:$0xff pattern:$0x73625140] }
  0x19   :  { %490 = vmatpush.bf16.msra.mxu1 %v807_v13  ;;  %v819_v40 = vld [vmem:[#allocation5 + $0xc0] sm:$0xff]  ;;  %v833_v43 = vld [vmem:[#allocation5 + $0x130] sm:$0xff]  ;;  %v69_v45 = vpack.c.bf16 %v55_v37, %v55_v37  ;;  %v70_v46 = vpack.c.bf16 %v56_v42, %v56_v42  ;;  %v832_v47 = vld [vmem:[#allocation5 + $0x128] sm:$0xff] }
  0x1a   :  { %503 = vmatpush.bf16.msra.mxu2 %v815_v14  ;;  %v843_v41 = vld [vmem:[#allocation5 + $0x180] sm:$0xff]  ;;  %v841_v44 = vld [vmem:[#allocation5 + $0x170] sm:$0xff]  ;;  %v840_v48 = vld [vmem:[#allocation5 + $0x168] sm:$0xff] }
  0x1b   :  { %516 = vmatpush.bf16.msra.mxu3 %v823_v16  ;;  %v831_v49 = vld [vmem:[#allocation5 + $0x120] sm:$0xff]  ;;  %v830_v51 = vld [vmem:[#allocation5 + $0x118] sm:$0xff]  ;;  %v829_v54 = vld [vmem:[#allocation5 + $0x110] sm:$0xff] }
  0x1c   :  { %478 = vmatpush.bf16.msra.mxu0 %v798_v17  ;;  %v839_v50 = vld [vmem:[#allocation5 + $0x160] sm:$0xff]  ;;  %v838_v52 = vld [vmem:[#allocation5 + $0x158] sm:$0xff]  ;;  %v837_v55 = vld [vmem:[#allocation5 + $0x150] sm:$0xff] }
  0x1d   :  { %491 = vmatpush.bf16.msra.mxu1 %v806_v18  ;;  %v59_v53 = vld.sshfl [vmem:[#allocation1 + $0x30] sm:$0xff pattern:$0x73625140]  ;;  %v828_v57 = vld [vmem:[#allocation5 + $0x108] sm:$0xff] }
  0x1e   :  { %504 = vmatpush.bf16.msra.mxu2 %v814_v20  ;;  %v73_v56 = vpack.c.bf16 %v59_v53, %v59_v53  ;;  %v836_v58 = vld [vmem:[#allocation5 + $0x148] sm:$0xff]  ;;  %v827_v59 = vld [vmem:[#allocation5 + $0x100] sm:$0xff]  ;;  %v58_v62 = vld.sshfl [vmem:[#allocation1 + $0x28] sm:$0xff pattern:$0x73625140] }
  0x1f   :  { %517 = vmatpush.bf16.msra.mxu3 %v822_v21  ;;  %v835_v60 = vld [vmem:[#allocation5 + $0x140] sm:$0xff]  ;;  %v57_v61 = vld.sshfl [vmem:[#allocation1 + $0x20] sm:$0xff pattern:$0x73625140]  ;;  %v72_v0 = vpack.c.bf16 %v58_v62, %v58_v62 }
  0x20   :  { %479 = vmatpush.bf16.msra.mxu0 %v797_v22  ;;  %v71_v63 = vpack.c.bf16 %v57_v61, %v57_v61  ;;  %v849_v7 = vld [vmem:[%s971_s2] ss:$0 sm:$0xff]  ;;  %s936_s2 = smov [#allocation7]  }
  0x21   :  { %492 = vmatpush.bf16.msra.mxu1 %v805_v23  ;;  %s585_s24 = sshll.u32 %s936_s2, 4  ;;  %s586_s24 = int_to_ptr.vmem [resolvable:$true] %s585_s24 }
  0x22   :  { %505 = vmatpush.bf16.msra.mxu2 %v813_v24 }
  0x23   :  { %518 = vmatpush.bf16.msra.mxu3 %v821_v25 }
  0x24   :  { %480 = vmatpush.bf16.msra.mxu0 %v796_v26 }
  0x25   :  { %493 = vmatpush.bf16.msra.mxu1 %v804_v27 }
  0x26   :  { %506 = vmatpush.bf16.msra.mxu2 %v812_v28 }
  0x27   :  { %519 = vmatpush.bf16.msra.mxu3 %v820_v31 }
  0x28   :  { %481 = vmatpush.bf16.msra.mxu0 %v795_v29 }
  0x29   :  { %494 = vmatpush.bf16.msra.mxu1 %v803_v30 }
  0x2a   :  { %507 = vmatpush.bf16.msra.mxu2 %v811_v36 }
  0x2b   :  { %482 = vmatmul.bf16.vlgmr.msra.gmra.mxu0 %v67_v38  ;;  %520 = vmatpush.bf16.msra.mxu3 %v819_v40 }
  0x2c   :  { %526 = vmatpush.bf16.msrb.mxu0 %v834_v34  ;;  %495 = vmatmul.bf16.vlgmr.msra.gmra.mxu1 %v68_v39 }
  0x2d   :  { %539 = vmatpush.bf16.msrb.mxu1 %v842_v35  ;;  %508 = vmatmul.bf16.vlgmr.msra.gmra.mxu2 %v69_v45 }
  0x2e   :  { %559 = vmatpush.bf16.msrb.mxu2 %v843_v41  ;;  %521 = vmatmul.bf16.vlgmr.msra.gmra.mxu3 %v70_v46 }
  0x30   :  { %527 = vmatpush.bf16.msrb.mxu0 %v833_v43 }
  0x31   :  { %540 = vmatpush.bf16.msrb.mxu1 %v841_v44 }
  0x34   :  { %528 = vmatpush.bf16.msrb.mxu0 %v832_v47 }
  0x35   :  { %541 = vmatpush.bf16.msrb.mxu1 %v840_v48 }
  0x38   :  { %529 = vmatpush.bf16.msrb.mxu0 %v831_v49 }
  0x39   :  { %542 = vmatpush.bf16.msrb.mxu1 %v839_v50 }
  0x3c   :  { %530 = vmatpush.bf16.msrb.mxu0 %v830_v51 }
  0x3d   :  { %543 = vmatpush.bf16.msrb.mxu1 %v838_v52  ;;  %794 = vmatmul.msk.bf16.vlgmr.msrb.gmra.mxu2 %vm470_vm0, %v73_v56 }
  0x40   :  { %531 = vmatpush.bf16.msrb.mxu0 %v829_v54 }
  0x41   :  { %544 = vmatpush.bf16.msrb.mxu1 %v837_v55 }
  0x44   :  { %532 = vmatpush.bf16.msrb.mxu0 %v828_v57 }
  0x45   :  { %545 = vmatpush.bf16.msrb.mxu1 %v836_v58 }
  0x48   :  { %533 = vmatpush.bf16.msrb.mxu0 %v827_v59 }
  0x49   :  { %546 = vmatpush.bf16.msrb.mxu1 %v835_v60 }
  0x4b   :  { %534 = vmatmul.bf16.vlgmr.msrb.gmra.mxu0 %v71_v63 }
  0x4c   :  { %547 = vmatmul.bf16.vlgmr.msrb.gmra.mxu1 %v72_v0 }
  0xa8   :  { %v483_v1 = vpop.f32.mrf.mxu0 }
  0xa9   :  { %v496_v2 = vpop.f32.mrf.mxu1  ;;  %v484_v8 = vadd.f32 %v849_v7, %v483_v1 }
  0xab   :  { %v497_v11 = vadd.f32 %v496_v2, %v484_v8 }
  0xb0   :  { %v485_v3 = vpop.f32.mrf.mxu0  ;;  %v509_v5 = vpop.f32.mrf.mxu2 }
  0xb1   :  { %v498_v4 = vpop.f32.mrf.mxu1  ;;  %v522_v6 = vpop.f32.mrf.mxu3  ;;  %v510_v12 = vadd.f32 %v509_v5, %v497_v11 }
  0xb3   :  { %v523_v14 = vadd.f32 %v522_v6, %v510_v12 }
  0xb8   :  { %v511_v9 = vpop.f32.mrf.mxu2 }
  0xb9   :  { %v524_v10 = vpop.f32.mrf.mxu3 }
  0xc0   :  { %v561_v13 = vpop.f32.mrf.mxu2 }
  0xc8   :  { %v535_v15 = vpop.f32.mrf.mxu0  ;;  %v563_v19 = vpop.f32.mrf.mxu2 }
  0xc9   :  { %v548_v16 = vpop.f32.mrf.mxu1  ;;  %v536_v17 = vadd.f32 %v535_v15, %v523_v14 }
  0xcb   :  { %v549_v18 = vadd.f32 %v548_v16, %v536_v17 }
  0xcd   :  { %v562_v20 = vadd.f32 %v561_v13, %v549_v18 }
  0xcf   :  { %v566_v21 = vsel %vm565_vm1, %v562_v20, -inf }
  0xd0   :  { %v537_v22 = vpop.f32.mrf.mxu0  ;;  %567 = vmax.xlane.f32.xlu0 %v566_v21 }
  0xd1   :  { %v550_v23 = vpop.f32.mrf.mxu1 }
 0x143   :  { %v568_v24 = vpop.xlane.xlu0 %567 }
 0x144   :  { %v569_v25 = vsub.f32 %v562_v20, %v568_v24 }
 0x146   :  { %v570_v26 = vmul.f32 1.442695, %v569_v25 }
 0x148   :  { %850 = vpow2.f32 %v570_v26 }
 0x14e   :  { %v851_v27 = vpop.eup %850 }
 0x14f   :  { %v572_v28 = vsel %vm565_vm1, %v851_v27, 0.0 }
 0x150   :  { %573 = vadd.xlane.f32.xlu0 %v572_v28 }
 0x1c3   :  { %v574_v29 = vpop.xlane.xlu0 %573 }
 0x1c4   :  { %852 = vlog2.f32 %v574_v29 }
 0x1ca   :  { %v853_v30 = vpop.eup %852 }
 0x1cb   :  { %v576_v31 = vmul.f32 0.6931472, %v853_v30 }
 0x1cd   :  { %v577_v32 = vsub.f32 %v569_v25, %v576_v31 }
 0x1cf   :  { %579 = vst.msk [vmem:[#allocation7] sm:$0x3] %vm578_vm2, %v577_v32 }
 0x1d0   :  { %590 = dma.vmem_to_hbm [thread:$0]  %s586_s24, 32, %s588_s27, [#allocation4]  }
 0x1d1   :  { %930 = dma.done.wait [#allocation4], 32  }
 0x1d2   :  { %931 = vsyncadd [#allocation4], 4294967264 }
 0x1d3   :  { %595 = vsyncpa [#allocation3], 1 }
 0x1d4   :  { %596 = vsyncpa [#allocation6], 1 }
 0x1d5   :  { %597 = vsyncpa [#allocation4], 1 }

</bundles_post_ra>
